<compile_context>
chip_gen: v7x
topology: tpu7x:2x2x1
jax: 0.10.0
libtpu: 0.0.40
codegen_flags: <defaults>
</compile_context>

<pallas_src>
import math

import jax
import jax.numpy as jnp
from jax.experimental import pallas as pl
from jax.experimental.pallas import tpu as pltpu


def _transe_kernel(tbl_ref, idx_ref, o_ref):
    """One fused one-hot gather matmul + sublane L1 reduction per batch tile."""
    tbl = tbl_ref[...]                 # (D, K) f32   -- concat(entity, relation), transposed
    idx = idx_ref[...]                 # (3, TB) i32  -- rows: h, t, r + E_pad
    k_rows = tbl.shape[1]
    tb = idx.shape[1]

    rows = jax.lax.broadcasted_iota(jnp.int32, (k_rows, tb), 0)

    h_idx = idx[0:1, :]                # (1, TB)
    t_idx = idx[1:2, :]
    r_idx = idx[2:3, :]                # already offset by E_pad in the wrapper

    # Single stacked one-hot: +h, -t, +r -> one MXU pass yields h_e - t_e + r_e.
    oh = ((rows == h_idx).astype(jnp.float32)
          - (rows == t_idx).astype(jnp.float32)
          + (rows == r_idx).astype(jnp.float32))             # (K, TB)

    # precision=HIGHEST keeps the f32 gather exact (no bf16 rounding pass).
    diff = jnp.dot(tbl, oh,
                   preferred_element_type=jnp.float32,
                   precision=jax.lax.Precision.HIGHEST)       # (D, TB)

    # L1 over the embedding dim (sublane axis, XLU) -> lane-dense (1, TB) store.
    o_ref[...] = jnp.sum(jnp.abs(diff), axis=0, keepdims=True)


def prepare_transe_tables(entity_emb, relation_emb):
    """One-time table prep, hoisted off the per-call path.

    Transposes both tables to (D, rows) so the batch sits on the lane axis,
    pads the entity rows to a multiple of 128 and the combined row count to a
    multiple of 256 (one clean MXU K pass on v6e/v7x), and concatenates.

    Returns (table_t, e_pad): relation indices must be offset by e_pad.
    """
    e_rows, _ = entity_emb.shape
    r_rows = relation_emb.shape[0]

    e_pad = 128 * pl.cdiv(e_rows, 128)
    k_rows = 256 * pl.cdiv(e_pad + r_rows, 256)
    r_pad = k_rows - e_pad

    ent_t = jnp.pad(entity_emb.T.astype(jnp.float32), ((0, 0), (0, e_pad - e_rows)))
    rel_t = jnp.pad(relation_emb.T.astype(jnp.float32), ((0, 0), (0, r_pad - r_rows)))
    table_t = jnp.concatenate([ent_t, rel_t], axis=1)          # (D, K)
    return table_t, int(e_pad)


def transe_forward(h, r, t, table_t, e_pad, *, batch_tile=512):
    """Pallas equivalent of TransEModel.forward: torch.norm(h_e + r_e - t_e, p=1, dim=1)."""
    B = h.shape[0]
    D, k_rows = table_t.shape

    # Lane tile: multiple of 128, clamped to the padded batch (tiny batches stay cheap).
    tile = min(batch_tile, 128 * pl.cdiv(B, 128))
    num_tiles = pl.cdiv(B, tile)
    b_pad = num_tiles * tile

    # Pack the three index streams into one (3, B_pad) i32 array:
    # row 0 = h, row 1 = t, row 2 = r + e_pad (offset into the concatenated table).
    idx = jnp.stack([h.astype(jnp.int32),
                     t.astype(jnp.int32),
                     r.astype(jnp.int32) + e_pad], axis=0)
    idx = jnp.pad(idx, ((0, 0), (0, b_pad - B)))

    # Explicit VMEM budget: resident table + index/output double buffers +
    # one-hot and gathered intermediates, with headroom.
    tile_bytes = 4 * tile
    vmem_bytes = (table_t.size * 4            # resident concat table
                  + 2 * 3 * tile_bytes        # packed-index double buffer
                  + 2 * tile_bytes            # output double buffer
                  + (k_rows + D) * tile_bytes # one-hot + gathered intermediates
                  + (4 << 20))                # headroom / spill margin
    vmem_limit = int(min(max(vmem_bytes, 32 << 20), 100 << 20))

    out = pl.pallas_call(
        _transe_kernel,
        out_shape=jax.ShapeDtypeStruct((1, b_pad), jnp.float32),
        grid=(num_tiles,),
        in_specs=[
            # Concatenated table: fully VMEM-resident, passed once, not pipelined.
            pl.BlockSpec(memory_space=pltpu.MemorySpace.VMEM),
            # Packed h/t/r indices: one DMA per grid step.
            pl.BlockSpec((3, tile), lambda i: (0, i)),
        ],
        out_specs=pl.BlockSpec((1, tile), lambda i: (0, i)),
        compiler_params=pltpu.CompilerParams(
            dimension_semantics=("parallel",),   # batch tiles shard across v7x's 2 TCs
            vmem_limit_bytes=vmem_limit),
    )(table_t, idx)

    return out[0, :B]


def init_transe_params(key, num_entities, num_relations, embedding_dim):
    """Deterministic re-implementation of TransEModel.__init__ parameter init."""
    k_ent, k_rel = jax.random.split(key)
    u = 6.0 / math.sqrt(embedding_dim)

    # nn.Embedding(num + 1, D); uniform_(-u, u) overwrites every row (incl. padding row).
    entity_emb = jax.random.uniform(
        k_ent, (num_entities + 1, embedding_dim),
        minval=-u, maxval=u, dtype=jnp.float32)

    relation_emb = jax.random.uniform(
        k_rel, (num_relations + 1, embedding_dim),
        minval=-u, maxval=u, dtype=jnp.float32)
    # rows [:-1] are L1-normalized, as in __init_relation_emb
    l1 = jnp.sum(jnp.abs(relation_emb[:-1]), axis=1, keepdims=True)
    relation_emb = relation_emb.at[:-1].set(relation_emb[:-1] / l1)

    return entity_emb, relation_emb


if __name__ == "__main__":
    NUM_ENTITIES = 40
    NUM_RELATIONS = 11
    EMBED_DIM = 32
    BATCH = 8

    key = jax.random.PRNGKey(0)
    k_params, k_h, k_r, k_t = jax.random.split(key, 4)

    entity_emb, relation_emb = init_transe_params(
        k_params, NUM_ENTITIES, NUM_RELATIONS, EMBED_DIM)

    # Table prep done ONCE (hoisted off the per-forward critical path).
    table_t, e_pad = prepare_transe_tables(entity_emb, relation_emb)

    h = jax.random.randint(k_h, (BATCH,), 0, NUM_ENTITIES, dtype=jnp.int32)
    r = jax.random.randint(k_r, (BATCH,), 0, NUM_RELATIONS, dtype=jnp.int32)
    t = jax.random.randint(k_t, (BATCH,), 0, NUM_ENTITIES, dtype=jnp.int32)

    out = transe_forward(h, r, t, table_t, e_pad)
    out = jax.block_until_ready(out)

    # Pure-JAX reference for correctness.
    ref = jnp.sum(
        jnp.abs(entity_emb[h] + relation_emb[r] - entity_emb[t]), axis=1)
    assert out.shape == (BATCH,)
    assert jnp.allclose(out, ref, rtol=1e-5, atol=1e-4), (out, ref)

    print("KERNEL_OK")
</pallas_src>

<mosaic_0001>
module attributes {stable_mosaic.version = 11 : i64} {
  func.func @_transe_kernel(%arg0: i32, %arg1: memref<32x256xf32, #tpu.memory_space<vmem>>, %arg2: memref<3x128xi32, #tpu.memory_space<vmem>>, %arg3: memref<1x128xf32, #tpu.memory_space<vmem>>) attributes {dimension_semantics = [#tpu.dimension_semantics<parallel>], iteration_bounds = array<i64: 1>, scalar_prefetch = 0 : i64, scratch_operands = 0 : i64, tpu.core_type = #tpu.core_type<tc>, window_params = [{pipeline_mode = #tpu.pipeline_mode<synchronous>, transform_indices = @transform_0, window_bounds = array<i64: 32, 256>}, {transform_indices = @transform_1, window_bounds = array<i64: 3, 128>}, {transform_indices = @transform_2, window_bounds = array<i64: 1, 128>}]} {
    %c0 = arith.constant 0 : index
    %c0_0 = arith.constant 0 : index
    %0 = vector.load %arg1[%c0, %c0_0] : memref<32x256xf32, #tpu.memory_space<vmem>>, vector<32x256xf32>
    %c0_1 = arith.constant 0 : index
    %c0_2 = arith.constant 0 : index
    %1 = vector.load %arg2[%c0_1, %c0_2] : memref<3x128xi32, #tpu.memory_space<vmem>>, vector<3x128xi32>
    %2 = tpu.iota {dimensions = array<i32: 0>} : vector<256x128xi32>
    %3 = vector.extract_strided_slice %1 {offsets = [0, 0], sizes = [1, 128], strides = [1, 1]} : vector<3x128xi32> to vector<1x128xi32>
    %4 = vector.extract_strided_slice %1 {offsets = [1, 0], sizes = [1, 128], strides = [1, 1]} : vector<3x128xi32> to vector<1x128xi32>
    %5 = vector.extract_strided_slice %1 {offsets = [2, 0], sizes = [1, 128], strides = [1, 1]} : vector<3x128xi32> to vector<1x128xi32>
    %6 = vector.broadcast %3 : vector<1x128xi32> to vector<256x128xi32>
    %7 = arith.cmpi eq, %2, %6 : vector<256x128xi32>
    %8 = arith.extui %7 : vector<256x128xi1> to vector<256x128xi32>
    %9 = arith.sitofp %8 : vector<256x128xi32> to vector<256x128xf32>
    %10 = vector.broadcast %4 : vector<1x128xi32> to vector<256x128xi32>
    %11 = arith.cmpi eq, %2, %10 : vector<256x128xi32>
    %12 = arith.extui %11 : vector<256x128xi1> to vector<256x128xi32>
    %13 = arith.sitofp %12 : vector<256x128xi32> to vector<256x128xf32>
    %14 = arith.subf %9, %13 : vector<256x128xf32>
    %15 = vector.broadcast %5 : vector<1x128xi32> to vector<256x128xi32>
    %16 = arith.cmpi eq, %2, %15 : vector<256x128xi32>
    %17 = arith.extui %16 : vector<256x128xi1> to vector<256x128xi32>
    %18 = arith.sitofp %17 : vector<256x128xi32> to vector<256x128xf32>
    %19 = arith.addf %14, %18 : vector<256x128xf32>
    %cst = arith.constant dense<0.000000e+00> : vector<32x128xf32>
    %20 = tpu.matmul %0, %19, %cst {dimension_numbers = #tpu.dot_dimension_numbers<[1], [0], [0], [1], [0, 0, 1, 1], [], []>, precision = #tpu.contract_precision<fp32>} : vector<32x256xf32>, vector<256x128xf32>, vector<32x128xf32> -> vector<32x128xf32>
    %21 = math.absf %20 : vector<32x128xf32>
    %cst_3 = arith.constant dense<0.000000e+00> : vector<128xf32>
    %22 = vector.multi_reduction <add>, %21, %cst_3 [0] : vector<32x128xf32> to vector<128xf32>
    %23 = vector.shape_cast %22 : vector<128xf32> to vector<1x128xf32>
    %c0_4 = arith.constant 0 : index
    %c0_5 = arith.constant 0 : index
    %24 = vector.load %arg3[%c0_4, %c0_5] : memref<1x128xf32, #tpu.memory_space<vmem>>, vector<1x128xf32>
    tpu.vector_store %arg3[%c0_4, %c0_5], %23 {strides = array<i32>} : memref<1x128xf32, #tpu.memory_space<vmem>>, vector<1x128xf32>,
    return
  }
  func.func @transform_0(%arg0: i32) -> (i32, i32) {
    %c0_i32 = arith.constant 0 : i32
    %c0_i32_0 = arith.constant 0 : i32
    %c0_i32_1 = arith.constant 0 : i32
    return %c0_i32, %c0_i32_0 : i32, i32
  }
  func.func @transform_1(%arg0: i32) -> (i32, i32) {
    %c0_i32 = arith.constant 0 : i32
    %c0_i32_0 = arith.constant 0 : i32
    return %c0_i32, %arg0 : i32, i32
  }
  func.func @transform_2(%arg0: i32) -> (i32, i32) {
    %c0_i32 = arith.constant 0 : i32
    %c0_i32_0 = arith.constant 0 : i32
    return %c0_i32, %arg0 : i32, i32
  }
}

</mosaic_0001>

<bundles_post_ra>
// kernel: tpu_custom_call.1
= control target key start
LH: loop header
LB: loop body
LE: loop exit
PB: predicated region body
PF: predicated region fallthrough
CT: control target
= control target key end

     0   :  { %7 = vsyncpa [#allocation3], 0  ;;  %s3025_s0 = inlined_call_operand.hbm [shape: f32[32,256], index: 0, kind: input, shape index: {}]   ;;  %s3026_s1 = inlined_call_operand.hbm [shape: s32[3,128], index: 1, kind: input, shape index: {}]   ;;  %s3027_s2 = inlined_call_operand.hbm [shape: f32[1,128], index: 2, kind: output, shape index: {}]  }
   0x1   :  { %8 = vsyncpa [#allocation6], 0 }
   0x2   :  { %9 = vsyncpa [#allocation4], 0  ;;  %s2134_s9 = smov [#allocation2]   ;;  %s2062_s13 = scalar_lea.hbm %s3025_s0, 1024 }
   0x3   :  { %s15_s10 = sshll.u32 %s2134_s9, 4  ;;  %p2063_p0 = scmp.ne.s32.totalorder %s3025_s0, %s2062_s13  ;;  %s16_s10 = int_to_ptr.vmem [resolvable:$true] %s15_s10 }
   0x4   :  { %p2066_p1 = scmp.lt.u32.totalorder %s2062_s13, %s3025_s0 }
   0x6   :  { %p2068_p2 = pnand %p2066_p1, %p2063_p0 }
   0x8   :  { %2071 = shalt.err (!%p2068_p2)
}
   0x9   :  { %s2072_s18 = scalar_lea.vmem %s16_s10, 1024  ;;  %p2077_p4 = scmp.lt.s32.totalorder %s16_s10, %s16_s10 }
   0xa   :  { %p2073_p3 = scmp.ne.s32.totalorder %s16_s10, %s2072_s18  ;;  %p2078_p5 = scmp.lt.s32.totalorder %s2072_s18, %s2072_s18 }
   0xc   :  { %p2079_p6 = por %p2078_p5, %p2077_p4 }
   0xe   :  { %p2080_p7 = pnand %p2079_p6, %p2073_p3 }
  0x10   :  { %2083 = shalt.err (!%p2080_p7)
}
  0x11   :  { %s2135_s19 = smov 256   ;;  %s2136_s20 = smov 16  }
  0x12   :  { %21 = dma.hbm_to_vmem [thread:$0]  %s3025_s0, 1024, %s16_s10, [#allocation3], %s2135_s19, %s2135_s19, %s2136_s20  }
  0x13   :  { %s2137_s23 = smov [#allocation5]   ;;  %s2084_s27 = scalar_lea.hbm %s3026_s1, 64 }
  0x14   :  { %s28_s24 = sshll.u32 %s2137_s23, 4  ;;  %p2085_p8 = scmp.ne.s32.totalorder %s3026_s1, %s2084_s27  ;;  %s29_s24 = int_to_ptr.vmem [resolvable:$true] %s28_s24 }
  0x15   :  { %p2088_p9 = scmp.lt.u32.totalorder %s2084_s27, %s3026_s1 }
  0x17   :  { %p2090_p10 = pnand %p2088_p9, %p2085_p8 }
  0x19   :  { %2093 = shalt.err (!%p2090_p10)
}
  0x1a   :  { %s2094_s4 = scalar_lea.vmem %s29_s24, 64  ;;  %p2099_p12 = scmp.lt.s32.totalorder %s29_s24, %s29_s24 }
  0x1b   :  { %p2095_p11 = scmp.ne.s32.totalorder %s29_s24, %s2094_s4  ;;  %p2100_p13 = scmp.lt.s32.totalorder %s2094_s4, %s2094_s4 }
  0x1d   :  { %p2101_p0 = por %p2100_p13, %p2099_p12 }
  0x1f   :  { %p2102_p1 = pnand %p2101_p0, %p2095_p11 }
  0x21   :  { %2105 = shalt.err (!%p2102_p1)
}
  0x22   :  { %31 = dma.hbm_to_vmem [thread:$0]  %s3026_s1, 64, %s29_s24, [#allocation6]  }
  0x23   :  { %2128 = dma.done.wait [#allocation3], 1024  }
  0x24   :  { %2129 = vsyncadd [#allocation3], 4294966272 }
  0x25   :  { %2130 = dma.done.wait [#allocation6], 64  }
  0x26   :  { %2131 = vsyncadd [#allocation6], 4294967232  ;;  %v47_v0 = vlaneseq  ;;  %v46_v14 = vld [vmem:[#allocation5] sm:$0x7]  ;;  %v2138_v27 = vmov 0.0   ;;  %s2139_s1 = smov [#allocation7]  }
  0x27   :  { %s1494_s6 = sshll.u32 %s2139_s1, 4  ;;  %s1495_s6 = int_to_ptr.vmem [resolvable:$true] %s1494_s6 }
  0x28   :  { %v2179_v1 = vshrl.u32 %v47_v0, 7  ;;  %s2106_s7 = scalar_lea.vmem %s1495_s6, 16  ;;  %s2110_s8 = scalar_lea.vmem %s1495_s6, 32 }
  0x29   :  { %p2107_p2 = scmp.ne.s32.totalorder %s1495_s6, %s2106_s7  ;;  %p2111_p3 = scmp.lt.s32.totalorder %s1495_s6, %s1495_s6 }
  0x2a   :  { %v82_v2 = vsub.s32 0, %v2179_v1  ;;  %v182_v3 = vsub.s32 1, %v2179_v1  ;;  %v314_v4 = vsub.s32 2, %v2179_v1  ;;  %v64_v5 = vadd.s32 128, %v2179_v1  ;;  %p2112_p4 = scmp.lt.s32.totalorder %s2110_s8, %s2106_s7 }
  0x2b   :  { %v65_v6 = vadd.s32 136, %v2179_v1  ;;  %v49_v7 = vadd.s32 8, %v2179_v1  ;;  %v2188_v8 = vadd.s32 144, %v2179_v1  ;;  %v2191_v9 = vadd.s32 152, %v2179_v1 }
  0x2c   :  { %v2194_v10 = vadd.s32 16, %v2179_v1  ;;  %v2197_v11 = vadd.s32 24, %v2179_v1  ;;  %v2200_v12 = vadd.s32 160, %v2179_v1  ;;  %v2203_v13 = vadd.s32 168, %v2179_v1  ;;  %p2113_p5 = por %p2112_p4, %p2111_p3 }
  0x2d   :  { %v2206_v15 = vadd.s32 32, %v2179_v1  ;;  %v2209_v16 = vadd.s32 40, %v2179_v1  ;;  %v2212_v17 = vadd.s32 176, %v2179_v1  ;;  %v2215_v18 = vadd.s32 184, %v2179_v1 }
  0x2e   :  { %v2217_v19 = vrot.slane %v46_v14, %v82_v2  ;;  %v2219_v20 = vrot.slane %v46_v14, %v182_v3  ;;  %v2221_v21 = vrot.slane %v46_v14, %v314_v4  ;;  %v2224_v22 = vadd.s32 48, %v2179_v1  ;;  %p2114_p6 = pnand %p2113_p5, %p2107_p2 }
  0x2f   :  { %v2227_v23 = vadd.s32 56, %v2179_v1  ;;  %v2230_v24 = vadd.s32 192, %v2179_v1  ;;  %v2233_v25 = vadd.s32 200, %v2179_v1  ;;  %v2236_v26 = vadd.s32 64, %v2179_v1 }
  0x30   :  { %vm100_vm0 = vcmp.eq.s32.totalorder %v64_v5, %v2217_v19  ;;  %vm101_vm1 = vcmp.eq.s32.totalorder %v65_v6, %v2217_v19  ;;  %vm200_vm2 = vcmp.eq.s32.totalorder %v64_v5, %v2219_v20  ;;  %vm201_vm3 = vcmp.eq.s32.totalorder %v65_v6, %v2219_v20 }
  0x31   :  { %v1520_v28 = vsel %vm100_vm0, 1.0, %v2138_v27  ;;  %v1521_v29 = vsel %vm101_vm1, 1.0, %v2138_v27  ;;  %v1552_v30 = vsel %vm200_vm2, 1.0, %v2138_v27  ;;  %v1553_v31 = vsel %vm201_vm3, 1.0, %v2138_v27 }
  0x32   :  { %v296_v32 = vsub.f32 %v1520_v28, %v1552_v30  ;;  %v297_v33 = vsub.f32 %v1521_v29, %v1553_v31  ;;  %vm332_vm4 = vcmp.eq.s32.totalorder %v64_v5, %v2221_v21  ;;  %vm333_vm5 = vcmp.eq.s32.totalorder %v65_v6, %v2221_v21 }
  0x33   :  { %v1584_v34 = vsel %vm332_vm4, 1.0, %v2138_v27  ;;  %v1585_v35 = vsel %vm333_vm5, 1.0, %v2138_v27  ;;  %vm84_vm6 = vcmp.eq.s32.totalorder %v2179_v1, %v2217_v19  ;;  %vm85_vm7 = vcmp.eq.s32.totalorder %v49_v7, %v2217_v19 }
  0x34   :  { %v2253_v36 = vadd.f32 %v1584_v34, %v296_v32  ;;  %v2255_v37 = vadd.f32 %v1585_v35, %v297_v33  ;;  %v1504_v38 = vsel %vm84_vm6, 1.0, %v2138_v27  ;;  %v1505_v39 = vsel %vm85_vm7, 1.0, %v2138_v27 }
  0x35   :  { %vm184_vm8 = vcmp.eq.s32.totalorder %v2179_v1, %v2219_v20  ;;  %vm185_vm9 = vcmp.eq.s32.totalorder %v49_v7, %v2219_v20  ;;  %vm316_vm10 = vcmp.eq.s32.totalorder %v2179_v1, %v2221_v21  ;;  %vm317_vm11 = vcmp.eq.s32.totalorder %v49_v7, %v2221_v21 }
  0x36   :  { %v493_v40 = vand.u32 4294901760, %v2253_v36  ;;  %v496_v41 = vand.u32 4294901760, %v2255_v37  ;;  %v1536_v42 = vsel %vm184_vm8, 1.0, %v2138_v27  ;;  %v1537_v43 = vsel %vm185_vm9, 1.0, %v2138_v27 }
  0x37   :  { %v280_v44 = vsub.f32 %v1504_v38, %v1536_v42  ;;  %v281_v45 = vsub.f32 %v1505_v39, %v1537_v43  ;;  %v1568_v46 = vsel %vm316_vm10, 1.0, %v2138_v27  ;;  %v1569_v47 = vsel %vm317_vm11, 1.0, %v2138_v27 }
  0x38   :  { %v2275_v48 = vpack.c.bf16 %v496_v41, %v493_v40  ;;  %vm102_vm12 = vcmp.eq.s32.totalorder %v2188_v8, %v2217_v19  ;;  %vm103_vm13 = vcmp.eq.s32.totalorder %v2191_v9, %v2217_v19  ;;  %vm202_vm14 = vcmp.eq.s32.totalorder %v2188_v8, %v2219_v20 }
  0x39   :  { %v412_v49 = vadd.f32 %v1568_v46, %v280_v44  ;;  %v413_v50 = vadd.f32 %v1569_v47, %v281_v45  ;;  %v1522_v51 = vsel %vm102_vm12, 1.0, %v2138_v27  ;;  %v1523_v52 = vsel %vm103_vm13, 1.0, %v2138_v27 }
  0x3a   :  { %3089 = vst [vmem:[#allocation11_spill] sm:$0xff] %v2275_v48  ;;  %1865 = vmatprep.subr.bf16.mxu0 %v2275_v48  ;;  %vm203_vm15 = vcmp.eq.s32.totalorder %v2191_v9, %v2219_v20  ;;  %v1554_v53 = vsel %vm202_vm14, 1.0, %v2138_v27  ;;  %vm334_vm0 = vcmp.eq.s32.totalorder %v2188_v8, %v2221_v21  ;;  %vm335_vm1 = vcmp.eq.s32.totalorder %v2191_v9, %v2221_v21 }
  0x3b   :  { %v445_v54 = vand.u32 4294901760, %v412_v49  ;;  %v448_v55 = vand.u32 4294901760, %v413_v50  ;;  %v1555_v56 = vsel %vm203_vm15, 1.0, %v2138_v27  ;;  %v298_v57 = vsub.f32 %v1522_v51, %v1554_v53 }
  0x3c   :  { %v299_v58 = vsub.f32 %v1523_v52, %v1555_v56  ;;  %v1586_v59 = vsel %vm334_vm0, 1.0, %v2138_v27  ;;  %v1587_v60 = vsel %vm335_vm1, 1.0, %v2138_v27  ;;  %vm86_vm2 = vcmp.eq.s32.totalorder %v2194_v10, %v2217_v19 }
  0x3d   :  { %v2298_v61 = vpack.c.bf16 %v448_v55, %v445_v54  ;;  %v2300_v62 = vsub.f32 %v412_v49, %v445_v54  ;;  %v2302_v63 = vsub.f32 %v413_v50, %v448_v55  ;;  %v430_v0 = vadd.f32 %v1586_v59, %v298_v57 }
  0x3e   :  { %v431_v2 = vadd.f32 %v1587_v60, %v299_v58  ;;  %vm87_vm3 = vcmp.eq.s32.totalorder %v2197_v11, %v2217_v19  ;;  %v1506_v3 = vsel %vm86_vm2, 1.0, %v2138_v27  ;;  %vm186_vm4 = vcmp.eq.s32.totalorder %v2194_v10, %v2219_v20 }
  0x3f   :  { %3090 = vst [vmem:[#allocation12_spill] sm:$0xff] %v2298_v61  ;;  %3091 = vst [vmem:[#allocation13_spill] sm:$0xff] %v2302_v63  ;;  %1867 = vmatpush3.bf16.msra.mxu0 %v2298_v61  ;;  %v499_v4 = vand.u32 4294901760, %v430_v0  ;;  %v1507_v5 = vsel %vm87_vm3, 1.0, %v2138_v27  ;;  %vm187_vm5 = vcmp.eq.s32.totalorder %v2197_v11, %v2219_v20  ;;  %v1538_v6 = vsel %vm186_vm4, 1.0, %v2138_v27 }
  0x40   :  { %v502_v7 = vand.u32 4294901760, %v431_v2  ;;  %v1539_v8 = vsel %vm187_vm5, 1.0, %v2138_v27  ;;  %v282_v9 = vsub.f32 %v1506_v3, %v1538_v6  ;;  %vm318_vm6 = vcmp.eq.s32.totalorder %v2194_v10, %v2221_v21 }
  0x41   :  { %v2317_v14 = vsub.f32 %v430_v0, %v499_v4  ;;  %v283_v28 = vsub.f32 %v1507_v5, %v1539_v8  ;;  %vm319_vm7 = vcmp.eq.s32.totalorder %v2197_v11, %v2221_v21  ;;  %v1570_v29 = vsel %vm318_vm6, 1.0, %v2138_v27 }
  0x42   :  { %v2322_v30 = vpack.c.bf16 %v502_v7, %v499_v4  ;;  %v2324_v31 = vsub.f32 %v431_v2, %v502_v7  ;;  %v1571_v32 = vsel %vm319_vm7, 1.0, %v2138_v27  ;;  %v414_v33 = vadd.f32 %v1570_v29, %v282_v9 }
  0x43   :  { %3092 = vst [vmem:[#allocation14_spill] sm:$0xff] %v2317_v14  ;;  %v415_v34 = vadd.f32 %v1571_v32, %v283_v28  ;;  %vm104_vm8 = vcmp.eq.s32.totalorder %v2200_v12, %v2217_v19  ;;  %vm105_vm9 = vcmp.eq.s32.totalorder %v2203_v13, %v2217_v19  ;;  %vm204_vm10 = vcmp.eq.s32.totalorder %v2200_v12, %v2219_v20 }
  0x44   :  { %3093 = vst [vmem:[#allocation15_spill] sm:$0xff] %v2322_v30  ;;  %3094 = vst [vmem:[#allocation16_spill] sm:$0xff] %v2324_v31  ;;  %1869 = vmatprep.subr.bf16.mxu0 %v2322_v30  ;;  %v451_v10 = vand.u32 4294901760, %v414_v33  ;;  %v1524_v11 = vsel %vm104_vm8, 1.0, %v2138_v27  ;;  %v1525_v35 = vsel %vm105_vm9, 1.0, %v2138_v27  ;;  %vm205_vm11 = vcmp.eq.s32.totalorder %v2203_v13, %v2219_v20 }
  0x45   :  { %v454_v38 = vand.u32 4294901760, %v415_v34  ;;  %v1556_v39 = vsel %vm204_vm10, 1.0, %v2138_v27  ;;  %v1557_v42 = vsel %vm205_vm11, 1.0, %v2138_v27  ;;  %vm336_vm12 = vcmp.eq.s32.totalorder %v2200_v12, %v2221_v21 }
  0x46   :  { %v2342_v43 = vsub.f32 %v414_v33, %v451_v10  ;;  %v300_v44 = vsub.f32 %v1524_v11, %v1556_v39  ;;  %v301_v45 = vsub.f32 %v1525_v35, %v1557_v42  ;;  %vm337_vm13 = vcmp.eq.s32.totalorder %v2203_v13, %v2221_v21 }
  0x47   :  { %v2346_v46 = vpack.c.bf16 %v454_v38, %v451_v10  ;;  %v2348_v47 = vsub.f32 %v415_v34, %v454_v38  ;;  %v1588_v49 = vsel %vm336_vm12, 1.0, %v2138_v27  ;;  %v1589_v50 = vsel %vm337_vm13, 1.0, %v2138_v27 }
  0x48   :  { %v432_v51 = vadd.f32 %v1588_v49, %v300_v44  ;;  %v433_v52 = vadd.f32 %v1589_v50, %v301_v45  ;;  %v2355_v12 = vsub.f32 %v2253_v36, %v493_v40  ;;  %v2360_v53 = vsub.f32 %v2255_v37, %v496_v41 }
  0x49   :  { %1871 = vmatpush3.bf16.msra.mxu0 %v2346_v46  ;;  %vm88_vm14 = vcmp.eq.s32.totalorder %v2206_v15, %v2217_v19  ;;  %vm89_vm15 = vcmp.eq.s32.totalorder %v2209_v16, %v2217_v19  ;;  %vm188_vm0 = vcmp.eq.s32.totalorder %v2206_v15, %v2219_v20  ;;  %vm189_vm1 = vcmp.eq.s32.totalorder %v2209_v16, %v2219_v20 }
  0x4a   :  { %v505_v13 = vand.u32 4294901760, %v432_v51  ;;  %v508_v36 = vand.u32 4294901760, %v433_v52  ;;  %v3039_v40 = vand.u32 4294901760, %v2355_v12  ;;  %v3038_v37 = vand.u32 4294901760, %v2360_v53 }
  0x4b   :  { %v1508_v41 = vsel %vm88_vm14, 1.0, %v2138_v27  ;;  %v1509_v54 = vsel %vm89_vm15, 1.0, %v2138_v27  ;;  %v1540_v55 = vsel %vm188_vm0, 1.0, %v2138_v27  ;;  %v1541_v56 = vsel %vm189_vm1, 1.0, %v2138_v27 }
  0x4c   :  { %v2377_v57 = vpack.c.bf16 %v508_v36, %v505_v13  ;;  %v2379_v58 = vsub.f32 %v432_v51, %v505_v13  ;;  %v2381_v59 = vsub.f32 %v433_v52, %v508_v36  ;;  %v717_v60 = vsub.f32 %v2355_v12, %v3039_v40 }
  0x4d   :  { %v724_v0 = vsub.f32 %v2360_v53, %v3038_v37  ;;  %v284_v2 = vsub.f32 %v1508_v41, %v1540_v55  ;;  %v285_v3 = vsub.f32 %v1509_v54, %v1541_v56  ;;  %vm320_vm2 = vcmp.eq.s32.totalorder %v2206_v15, %v2221_v21 }
  0x4e   :  { %3095 = vst [vmem:[#allocation17_spill] sm:$0xff] %v2379_v58  ;;  %3096 = vst [vmem:[#allocation18_spill] sm:$0xff] %v2381_v59  ;;  %1873 = vmatprep.subr.bf16.mxu0 %v2377_v57  ;;  %v718_v4 = vand.u32 4294901760, %v717_v60  ;;  %vm321_vm3 = vcmp.eq.s32.totalorder %v2209_v16, %v2221_v21  ;;  %v1572_v5 = vsel %vm320_vm2, 1.0, %v2138_v27  ;;  %v3037_v6 = vand.u32 4294901760, %v2300_v62 }
  0x4f   :  { %v725_v7 = vand.u32 4294901760, %v724_v0  ;;  %v1573_v8 = vsel %vm321_vm3, 1.0, %v2138_v27  ;;  %v416_v9 = vadd.f32 %v1572_v5, %v284_v2  ;;  %v3036_v28 = vand.u32 4294901760, %v2302_v63 }
  0x50   :  { %v417_v29 = vadd.f32 %v1573_v8, %v285_v3  ;;  %v605_v15 = vsub.f32 %v2300_v62, %v3037_v6  ;;  %vm106_vm4 = vcmp.eq.s32.totalorder %v2212_v17, %v2217_v19  ;;  %vm107_vm5 = vcmp.eq.s32.totalorder %v2215_v18, %v2217_v19 }
  0x51   :  { %v1896_v16 = vpack.c.bf16 %v725_v7, %v718_v4  ;;  %v457_v32 = vand.u32 4294901760, %v416_v9  ;;  %v612_v33 = vsub.f32 %v2302_v63, %v3036_v28  ;;  %v1526_v34 = vsel %vm106_vm4, 1.0, %v2138_v27 }
  0x52   :  { %v460_v10 = vand.u32 4294901760, %v417_v29  ;;  %v606_v11 = vand.u32 4294901760, %v605_v15  ;;  %v1527_v35 = vsel %vm107_vm5, 1.0, %v2138_v27  ;;  %vm206_vm6 = vcmp.eq.s32.totalorder %v2212_v17, %v2219_v20 }
  0x53   :  { %1897 = vmatprep.subr.bf16.mxu1 %v1896_v16  ;;  %v2412_v38 = vsub.f32 %v416_v9, %v457_v32  ;;  %v613_v39 = vand.u32 4294901760, %v612_v33  ;;  %vm207_vm7 = vcmp.eq.s32.totalorder %v2215_v18, %v2219_v20  ;;  %v1558_v42 = vsel %vm206_vm6, 1.0, %v2138_v27 }
  0x54   :  { %v2417_v44 = vpack.c.bf16 %v460_v10, %v457_v32  ;;  %v2419_v45 = vsub.f32 %v417_v29, %v460_v10  ;;  %v1559_v49 = vsel %vm207_vm7, 1.0, %v2138_v27  ;;  %v302_v50 = vsub.f32 %v1526_v34, %v1558_v42 }
  0x55   :  { %v1898_v51 = vpack.c.bf16 %v613_v39, %v606_v11  ;;  %v303_v52 = vsub.f32 %v1527_v35, %v1559_v49  ;;  %vm338_vm8 = vcmp.eq.s32.totalorder %v2212_v17, %v2221_v21  ;;  %vm339_vm9 = vcmp.eq.s32.totalorder %v2215_v18, %v2221_v21 }
  0x56   :  { %3097 = vst [vmem:[#allocation19_spill] sm:$0xff] %v2419_v45  ;;  %1875 = vmatpush3.bf16.msra.mxu0 %v2417_v44  ;;  %v1590_v13 = vsel %vm338_vm8, 1.0, %v2138_v27  ;;  %v1591_v36 = vsel %vm339_vm9, 1.0, %v2138_v27  ;;  %v3035_v41 = vand.u32 4294901760, %v2317_v14  ;;  %v3034_v54 = vand.u32 4294901760, %v2324_v31 }
  0x57   :  { %1899 = vmatpush3.bf16.msra.mxu1 %v1898_v51  ;;  %v434_v55 = vadd.f32 %v1590_v13, %v302_v50  ;;  %v435_v56 = vadd.f32 %v1591_v36, %v303_v52  ;;  %vm90_vm10 = vcmp.eq.s32.totalorder %v2224_v22, %v2217_v19  ;;  %vm91_vm11 = vcmp.eq.s32.totalorder %v2227_v23, %v2217_v19 }
  0x58   :  { %v731_v17 = vsub.f32 %v2317_v14, %v3035_v41  ;;  %v738_v18 = vsub.f32 %v2324_v31, %v3034_v54  ;;  %v1510_v60 = vsel %vm90_vm10, 1.0, %v2138_v27  ;;  %v1511_v0 = vsel %vm91_vm11, 1.0, %v2138_v27 }
  0x59   :  { %v511_v2 = vand.u32 4294901760, %v434_v55  ;;  %v514_v3 = vand.u32 4294901760, %v435_v56  ;;  %vm190_vm12 = vcmp.eq.s32.totalorder %v2224_v22, %v2219_v20  ;;  %vm191_vm13 = vcmp.eq.s32.totalorder %v2227_v23, %v2219_v20 }
  0x5a   :  { %v732_v4 = vand.u32 4294901760, %v731_v17  ;;  %v739_v5 = vand.u32 4294901760, %v738_v18  ;;  %v1542_v7 = vsel %vm190_vm12, 1.0, %v2138_v27  ;;  %v1543_v8 = vsel %vm191_vm13, 1.0, %v2138_v27 }
  0x5b   :  { %v2449_v9 = vpack.c.bf16 %v514_v3, %v511_v2  ;;  %v2451_v29 = vsub.f32 %v434_v55, %v511_v2  ;;  %v2453_v15 = vsub.f32 %v435_v56, %v514_v3  ;;  %v286_v16 = vsub.f32 %v1510_v60, %v1542_v7 }
  0x5c   :  { %v1900_v32 = vpack.c.bf16 %v739_v5, %v732_v4  ;;  %v287_v33 = vsub.f32 %v1511_v0, %v1543_v8  ;;  %vm322_vm14 = vcmp.eq.s32.totalorder %v2224_v22, %v2221_v21  ;;  %vm323_vm15 = vcmp.eq.s32.totalorder %v2227_v23, %v2221_v21 }
  0x5d   :  { %1877 = vmatprep.subr.bf16.mxu0 %v2449_v9  ;;  %v1574_v34 = vsel %vm322_vm14, 1.0, %v2138_v27  ;;  %v1575_v10 = vsel %vm323_vm15, 1.0, %v2138_v27  ;;  %v3033_v11 = vand.u32 4294901760, %v2342_v43  ;;  %v3032_v35 = vand.u32 4294901760, %v2348_v47 }
  0x5e   :  { %1901 = vmatprep.subr.bf16.mxu1 %v1900_v32  ;;  %v418_v39 = vadd.f32 %v1574_v34, %v286_v16  ;;  %v419_v42 = vadd.f32 %v1575_v10, %v287_v33  ;;  %vm108_vm0 = vcmp.eq.s32.totalorder %v2230_v24, %v2217_v19  ;;  %vm109_vm1 = vcmp.eq.s32.totalorder %v2233_v25, %v2217_v19 }
  0x5f   :  { %v619_v22 = vsub.f32 %v2342_v43, %v3033_v11  ;;  %v626_v23 = vsub.f32 %v2348_v47, %v3032_v35  ;;  %v1528_v49 = vsel %vm108_vm0, 1.0, %v2138_v27  ;;  %v1529_v50 = vsel %vm109_vm1, 1.0, %v2138_v27 }
  0x60   :  { %v463_v51 = vand.u32 4294901760, %v418_v39  ;;  %v466_v52 = vand.u32 4294901760, %v419_v42  ;;  %vm208_vm2 = vcmp.eq.s32.totalorder %v2230_v24, %v2219_v20  ;;  %vm209_vm3 = vcmp.eq.s32.totalorder %v2233_v25, %v2219_v20 }
  0x61   :  { %v620_v13 = vand.u32 4294901760, %v619_v22  ;;  %v627_v36 = vand.u32 4294901760, %v626_v23  ;;  %v1560_v55 = vsel %vm208_vm2, 1.0, %v2138_v27  ;;  %v1561_v56 = vsel %vm209_vm3, 1.0, %v2138_v27 }
  0x62   :  { %v2482_v17 = vpack.c.bf16 %v466_v52, %v463_v51  ;;  %v2484_v18 = vsub.f32 %v418_v39, %v463_v51  ;;  %v2486_v60 = vsub.f32 %v419_v42, %v466_v52  ;;  %v304_v0 = vsub.f32 %v1528_v49, %v1560_v55 }
  0x63   :  { %v1902_v2 = vpack.c.bf16 %v627_v36, %v620_v13  ;;  %v305_v3 = vsub.f32 %v1529_v50, %v1561_v56  ;;  %vm340_vm4 = vcmp.eq.s32.totalorder %v2230_v24, %v2221_v21  ;;  %vm341_vm5 = vcmp.eq.s32.totalorder %v2233_v25, %v2221_v21 }
  0x64   :  { %1879 = vmatpush3.bf16.msra.mxu0 %v2482_v17  ;;  %v1592_v4 = vsel %vm340_vm4, 1.0, %v2138_v27  ;;  %v1593_v5 = vsel %vm341_vm5, 1.0, %v2138_v27  ;;  %v3031_v7 = vand.u32 4294901760, %v2379_v58  ;;  %v3030_v8 = vand.u32 4294901760, %v2381_v59 }
  0x65   :  { %1903 = vmatpush3.bf16.msra.mxu1 %v1902_v2  ;;  %v436_v16 = vadd.f32 %v1592_v4, %v304_v0  ;;  %v437_v32 = vadd.f32 %v1593_v5, %v305_v3  ;;  %v57_v33 = vadd.s32 72, %v2179_v1  ;;  %vm92_vm6 = vcmp.eq.s32.totalorder %v2236_v26, %v2217_v19 }
  0x66   :  { %v745_v24 = vsub.f32 %v2379_v58, %v3031_v7  ;;  %v752_v25 = vsub.f32 %v2381_v59, %v3030_v8  ;;  %v1512_v34 = vsel %vm92_vm6, 1.0, %v2138_v27  ;;  %vm192_vm7 = vcmp.eq.s32.totalorder %v2236_v26, %v2219_v20 }
  0x67   :  { %v517_v10 = vand.u32 4294901760, %v436_v16  ;;  %v520_v39 = vand.u32 4294901760, %v437_v32  ;;  %vm93_vm8 = vcmp.eq.s32.totalorder %v57_v33, %v2217_v19  ;;  %vm193_vm9 = vcmp.eq.s32.totalorder %v57_v33, %v2219_v20 }
  0x68   :  { %v746_v42 = vand.u32 4294901760, %v745_v24  ;;  %v753_v22 = vand.u32 4294901760, %v752_v25  ;;  %v1513_v23 = vsel %vm93_vm8, 1.0, %v2138_v27  ;;  %v1544_v49 = vsel %vm192_vm7, 1.0, %v2138_v27 }
  0x69   :  { %v2513_v50 = vpack.c.bf16 %v520_v39, %v517_v10  ;;  %v2515_v51 = vsub.f32 %v436_v16, %v517_v10  ;;  %v2517_v52 = vsub.f32 %v437_v32, %v520_v39  ;;  %v1545_v13 = vsel %vm193_vm9, 1.0, %v2138_v27 }
  0x6a   :  { %v1904_v36 = vpack.c.bf16 %v753_v22, %v746_v42  ;;  %v288_v55 = vsub.f32 %v1512_v34, %v1544_v49  ;;  %v289_v56 = vsub.f32 %v1513_v23, %v1545_v13  ;;  %vm324_vm10 = vcmp.eq.s32.totalorder %v2236_v26, %v2221_v21 }
  0x6b   :  { %1881 = vmatprep.subr.bf16.mxu0 %v2513_v50  ;;  %vm325_vm11 = vcmp.eq.s32.totalorder %v57_v33, %v2221_v21  ;;  %v1576_v0 = vsel %vm324_vm10, 1.0, %v2138_v27  ;;  %v3029_v2 = vand.u32 4294901760, %v2412_v38  ;;  %v3028_v3 = vand.u32 4294901760, %v2419_v45 }
  0x6c   :  { %1905 = vmatprep.subr.bf16.mxu1 %v1904_v36  ;;  %v1577_v4 = vsel %vm325_vm11, 1.0, %v2138_v27  ;;  %v420_v5 = vadd.f32 %v1576_v0, %v288_v55  ;;  %v74_v16 = vadd.s32 208, %v2179_v1  ;;  %v75_v32 = vadd.s32 216, %v2179_v1 }
  0x6d   :  { %v421_v24 = vadd.f32 %v1577_v4, %v289_v56  ;;  %v633_v26 = vsub.f32 %v2412_v38, %v3029_v2  ;;  %v640_v33 = vsub.f32 %v2419_v45, %v3028_v3  ;;  %v3047_v25 = vand.u32 4294901760, %v2451_v29 }
  0x6e   :  { %v469_v34 = vand.u32 4294901760, %v420_v5  ;;  %vm110_vm12 = vcmp.eq.s32.totalorder %v74_v16, %v2217_v19  ;;  %vm111_vm13 = vcmp.eq.s32.totalorder %v75_v32, %v2217_v19  ;;  %vm210_vm14 = vcmp.eq.s32.totalorder %v74_v16, %v2219_v20 }
  0x6f   :  { %v472_v10 = vand.u32 4294901760, %v421_v24  ;;  %v634_v39 = vand.u32 4294901760, %v633_v26  ;;  %v641_v42 = vand.u32 4294901760, %v640_v33  ;;  %v1530_v22 = vsel %vm110_vm12, 1.0, %v2138_v27 }
  0x70   :  { %v2541_v23 = vsub.f32 %v420_v5, %v469_v34  ;;  %v1531_v49 = vsel %vm111_vm13, 1.0, %v2138_v27  ;;  %vm211_vm15 = vcmp.eq.s32.totalorder %v75_v32, %v2219_v20  ;;  %v1562_v13 = vsel %vm210_vm14, 1.0, %v2138_v27 }
  0x71   :  { %v2546_v36 = vpack.c.bf16 %v472_v10, %v469_v34  ;;  %v2548_v55 = vsub.f32 %v421_v24, %v472_v10  ;;  %v1906_v56 = vpack.c.bf16 %v641_v42, %v634_v39  ;;  %v1563_v0 = vsel %vm211_vm15, 1.0, %v2138_v27 }
  0x72   :  { %v306_v4 = vsub.f32 %v1530_v22, %v1562_v13  ;;  %v307_v26 = vsub.f32 %v1531_v49, %v1563_v0  ;;  %vm342_vm0 = vcmp.eq.s32.totalorder %v74_v16, %v2221_v21  ;;  %vm343_vm1 = vcmp.eq.s32.totalorder %v75_v32, %v2221_v21 }
  0x73   :  { %1883 = vmatpush3.bf16.msra.mxu0 %v2546_v36  ;;  %1907 = vmatpush3.bf16.msra.mxu1 %v1906_v56  ;;  %v1594_v5 = vsel %vm342_vm0, 1.0, %v2138_v27  ;;  %v1595_v33 = vsel %vm343_vm1, 1.0, %v2138_v27  ;;  %v759_v24 = vsub.f32 %v2451_v29, %v3047_v25  ;;  %v3046_v34 = vand.u32 4294901760, %v2453_v15 }
  0x74   :  { %v438_v10 = vadd.f32 %v1594_v5, %v306_v4  ;;  %v439_v39 = vadd.f32 %v1595_v33, %v307_v26  ;;  %v58_v42 = vadd.s32 80, %v2179_v1  ;;  %v59_v16 = vadd.s32 88, %v2179_v1 }
  0x75   :  { %v760_v32 = vand.u32 4294901760, %v759_v24  ;;  %v766_v22 = vsub.f32 %v2453_v15, %v3046_v34  ;;  %v3045_v49 = vand.u32 4294901760, %v2484_v18  ;;  %v3042_v13 = vand.u32 4294901760, %v2486_v60 }
  0x76   :  { %v523_v56 = vand.u32 4294901760, %v438_v10  ;;  %v526_v0 = vand.u32 4294901760, %v439_v39  ;;  %vm94_vm2 = vcmp.eq.s32.totalorder %v58_v42, %v2217_v19  ;;  %vm95_vm3 = vcmp.eq.s32.totalorder %v59_v16, %v2217_v19 }
  0x77   :  { %v767_v4 = vand.u32 4294901760, %v766_v22  ;;  %v1514_v26 = vsel %vm94_vm2, 1.0, %v2138_v27  ;;  %v1515_v5 = vsel %vm95_vm3, 1.0, %v2138_v27  ;;  %vm194_vm4 = vcmp.eq.s32.totalorder %v58_v42, %v2219_v20 }
  0x78   :  { %v2572_v33 = vpack.c.bf16 %v526_v0, %v523_v56  ;;  %v2574_v24 = vsub.f32 %v438_v10, %v523_v56  ;;  %v2576_v3 = vsub.f32 %v439_v39, %v526_v0  ;;  %vm195_vm5 = vcmp.eq.s32.totalorder %v59_v16, %v2219_v20 }
  0x79   :  { %v1908_v2 = vpack.c.bf16 %v767_v4, %v760_v32  ;;  %v1546_v8 = vsel %vm194_vm4, 1.0, %v2138_v27  ;;  %v1547_v7 = vsel %vm195_vm5, 1.0, %v2138_v27  ;;  %vm326_vm6 = vcmp.eq.s32.totalorder %v58_v42, %v2221_v21 }
  0x7a   :  { %1885 = vmatprep.subr.bf16.mxu0 %v2572_v33  ;;  %v290_v22 = vsub.f32 %v1514_v26, %v1546_v8  ;;  %v291_v35 = vsub.f32 %v1515_v5, %v1547_v7  ;;  %vm327_vm7 = vcmp.eq.s32.totalorder %v59_v16, %v2221_v21  ;;  %v1578_v10 = vsel %vm326_vm6, 1.0, %v2138_v27 }
  0x7b   :  { %1909 = vmatprep.subr.bf16.mxu1 %v1908_v2  ;;  %v1579_v39 = vsel %vm327_vm7, 1.0, %v2138_v27  ;;  %v647_v32 = vsub.f32 %v2484_v18, %v3045_v49  ;;  %v654_v56 = vsub.f32 %v2486_v60, %v3042_v13  ;;  %v76_v42 = vadd.s32 224, %v2179_v1 }
  0x7c   :  { %v422_v0 = vadd.f32 %v1578_v10, %v290_v22  ;;  %v423_v8 = vadd.f32 %v1579_v39, %v291_v35  ;;  %v77_v7 = vadd.s32 232, %v2179_v1  ;;  %v3041_v16 = vand.u32 4294901760, %v2515_v51 }
  0x7d   :  { %v648_v4 = vand.u32 4294901760, %v647_v32  ;;  %v655_v2 = vand.u32 4294901760, %v654_v56  ;;  %vm112_vm8 = vcmp.eq.s32.totalorder %v76_v42, %v2217_v19  ;;  %vm212_vm9 = vcmp.eq.s32.totalorder %v76_v42, %v2219_v20 }
  0x7e   :  { %v475_v26 = vand.u32 4294901760, %v422_v0  ;;  %v478_v5 = vand.u32 4294901760, %v423_v8  ;;  %vm113_vm10 = vcmp.eq.s32.totalorder %v77_v7, %v2217_v19  ;;  %v1532_v11 = vsel %vm112_vm8, 1.0, %v2138_v27 }
  0x7f   :  { %v1910_v54 = vpack.c.bf16 %v655_v2, %v648_v4  ;;  %v1533_v22 = vsel %vm113_vm10, 1.0, %v2138_v27  ;;  %vm213_vm11 = vcmp.eq.s32.totalorder %v77_v7, %v2219_v20  ;;  %v1564_v35 = vsel %vm212_vm9, 1.0, %v2138_v27 }
  0x80   :  { %v2602_v10 = vpack.c.bf16 %v478_v5, %v475_v26  ;;  %v2604_v39 = vsub.f32 %v422_v0, %v475_v26  ;;  %v2606_v32 = vsub.f32 %v423_v8, %v478_v5  ;;  %v1565_v56 = vsel %vm213_vm11, 1.0, %v2138_v27 }
  0x81   :  { %1911 = vmatpush3.bf16.msra.mxu1 %v1910_v54  ;;  %v308_v41 = vsub.f32 %v1532_v11, %v1564_v35  ;;  %v309_v28 = vsub.f32 %v1533_v22, %v1565_v56  ;;  %vm344_vm12 = vcmp.eq.s32.totalorder %v76_v42, %v2221_v21  ;;  %vm345_vm13 = vcmp.eq.s32.totalorder %v77_v7, %v2221_v21 }
  0x82   :  { %1887 = vmatpush3.bf16.msra.mxu0 %v2602_v10  ;;  %v1596_v4 = vsel %vm344_vm12, 1.0, %v2138_v27  ;;  %v1597_v2 = vsel %vm345_vm13, 1.0, %v2138_v27  ;;  %v773_v0 = vsub.f32 %v2515_v51, %v3041_v16  ;;  %v3040_v8 = vand.u32 4294901760, %v2517_v52 }
  0x83   :  { %v440_v26 = vadd.f32 %v1596_v4, %v308_v41  ;;  %v441_v54 = vadd.f32 %v1597_v2, %v309_v28  ;;  %v60_v11 = vadd.s32 96, %v2179_v1  ;;  %v61_v42 = vadd.s32 104, %v2179_v1 }
  0x84   :  { %v774_v5 = vand.u32 4294901760, %v773_v0  ;;  %v780_v7 = vsub.f32 %v2517_v52, %v3040_v8  ;;  %v3044_v22 = vand.u32 4294901760, %v2541_v23  ;;  %v3043_v35 = vand.u32 4294901760, %v2548_v55 }
  0x85   :  { %v529_v56 = vand.u32 4294901760, %v440_v26  ;;  %v532_v6 = vand.u32 4294901760, %v441_v54  ;;  %vm96_vm14 = vcmp.eq.s32.totalorder %v60_v11, %v2217_v19  ;;  %vm97_vm15 = vcmp.eq.s32.totalorder %v61_v42, %v2217_v19 }
  0x86   :  { %v781_v28 = vand.u32 4294901760, %v780_v7  ;;  %v1516_v41 = vsel %vm96_vm14, 1.0, %v2138_v27  ;;  %v1517_v4 = vsel %vm97_vm15, 1.0, %v2138_v27  ;;  %vm196_vm0 = vcmp.eq.s32.totalorder %v60_v11, %v2219_v20 }
  0x87   :  { %v2630_v2 = vpack.c.bf16 %v532_v6, %v529_v56  ;;  %v2632_v0 = vsub.f32 %v440_v26, %v529_v56  ;;  %v2634_v37 = vsub.f32 %v441_v54, %v532_v6  ;;  %vm197_vm1 = vcmp.eq.s32.totalorder %v61_v42, %v2219_v20 }
  0x88   :  { %v1912_v40 = vpack.c.bf16 %v781_v28, %v774_v5  ;;  %v1548_v8 = vsel %vm196_vm0, 1.0, %v2138_v27  ;;  %v1549_v16 = vsel %vm197_vm1, 1.0, %v2138_v27  ;;  %vm328_vm2 = vcmp.eq.s32.totalorder %v60_v11, %v2221_v21 }
  0x89   :  { %3098 = vst [vmem:[#allocation20_spill] sm:$0xff] %v2630_v2  ;;  %1889 = vmatprep.subr.bf16.mxu0 %v2630_v2  ;;  %v292_v7 = vsub.f32 %v1516_v41, %v1548_v8  ;;  %v293_v13 = vsub.f32 %v1517_v4, %v1549_v16  ;;  %vm329_vm3 = vcmp.eq.s32.totalorder %v61_v42, %v2221_v21  ;;  %v1580_v26 = vsel %vm328_vm2, 1.0, %v2138_v27 }
  0x8a   :  { %1913 = vmatprep.subr.bf16.mxu1 %v1912_v40  ;;  %v1581_v6 = vsel %vm329_vm3, 1.0, %v2138_v27  ;;  %v661_v54 = vsub.f32 %v2541_v23, %v3044_v22  ;;  %v668_v5 = vsub.f32 %v2548_v55, %v3043_v35  ;;  %v78_v11 = vadd.s32 240, %v2179_v1 }
  0x8b   :  { %v424_v56 = vadd.f32 %v1580_v26, %v292_v7  ;;  %v425_v8 = vadd.f32 %v1581_v6, %v293_v13  ;;  %v79_v16 = vadd.s32 248, %v2179_v1  ;;  %v3049_v42 = vand.u32 4294901760, %v2574_v24 }
  0x8c   :  { %v662_v28 = vand.u32 4294901760, %v661_v54  ;;  %v669_v40 = vand.u32 4294901760, %v668_v5  ;;  %vm114_vm4 = vcmp.eq.s32.totalorder %v78_v11, %v2217_v19  ;;  %vm214_vm5 = vcmp.eq.s32.totalorder %v78_v11, %v2219_v20 }
  0x8d   :  { %v481_v41 = vand.u32 4294901760, %v424_v56  ;;  %v484_v4 = vand.u32 4294901760, %v425_v8  ;;  %vm115_vm6 = vcmp.eq.s32.totalorder %v79_v16, %v2217_v19  ;;  %v1534_v35 = vsel %vm114_vm4, 1.0, %v2138_v27 }
  0x8e   :  { %v1914_v22 = vpack.c.bf16 %v669_v40, %v662_v28  ;;  %v1535_v7 = vsel %vm115_vm6, 1.0, %v2138_v27  ;;  %vm215_vm7 = vcmp.eq.s32.totalorder %v79_v16, %v2219_v20  ;;  %v1566_v13 = vsel %vm214_vm5, 1.0, %v2138_v27 }
  0x8f   :  { %v2660_v26 = vpack.c.bf16 %v484_v4, %v481_v41  ;;  %v2662_v6 = vsub.f32 %v424_v56, %v481_v41  ;;  %v2664_v54 = vsub.f32 %v425_v8, %v484_v4  ;;  %v1567_v5 = vsel %vm215_vm7, 1.0, %v2138_v27 }
  0x90   :  { %1915 = vmatpush3.bf16.msra.mxu1 %v1914_v22  ;;  %v310_v49 = vsub.f32 %v1534_v35, %v1566_v13  ;;  %v311_v34 = vsub.f32 %v1535_v7, %v1567_v5  ;;  %vm346_vm8 = vcmp.eq.s32.totalorder %v78_v11, %v2221_v21  ;;  %vm347_vm9 = vcmp.eq.s32.totalorder %v79_v16, %v2221_v21 }
  0x91   :  { %3099 = vst [vmem:[#allocation21_spill] sm:$0xff] %v2660_v26  ;;  %1891 = vmatpush3.bf16.msra.mxu0 %v2660_v26  ;;  %v1598_v28 = vsel %vm346_vm8, 1.0, %v2138_v27  ;;  %v1599_v40 = vsel %vm347_vm9, 1.0, %v2138_v27  ;;  %v787_v56 = vsub.f32 %v2574_v24, %v3049_v42  ;;  %v3048_v8 = vand.u32 4294901760, %v2576_v3 }
  0x92   :  { %v442_v41 = vadd.f32 %v1598_v28, %v310_v49  ;;  %v443_v22 = vadd.f32 %v1599_v40, %v311_v34  ;;  %v62_v35 = vadd.s32 112, %v2179_v1  ;;  %v63_v11 = vadd.s32 120, %v2179_v1 }
  0x93   :  { %v788_v4 = vand.u32 4294901760, %v787_v56  ;;  %v794_v16 = vsub.f32 %v2576_v3, %v3048_v8  ;;  %v39_v8 = vld [vmem:[#allocation2 + $0x8] sm:$0xff]  ;;  %v1936_v2 = vpack.c.bf16 %v2381_v59, %v2379_v58  ;;  %v45_v58 = vld [vmem:[#allocation2 + $0x38] sm:$0xff] }
  0x94   :  { %v535_v5 = vand.u32 4294901760, %v442_v41  ;;  %v538_v25 = vand.u32 4294901760, %v443_v22  ;;  %vm98_vm10 = vcmp.eq.s32.totalorder %v62_v35, %v2217_v19  ;;  %vm99_vm11 = vcmp.eq.s32.totalorder %v63_v11, %v2217_v19 }
  0x95   :  { %v795_v34 = vand.u32 4294901760, %v794_v16  ;;  %v1518_v49 = vsel %vm98_vm10, 1.0, %v2138_v27  ;;  %v1519_v1 = vsel %vm99_vm11, 1.0, %v2138_v27  ;;  %vm198_vm12 = vcmp.eq.s32.totalorder %v62_v35, %v2219_v20 }
  0x96   :  { %v2688_v28 = vpack.c.bf16 %v538_v25, %v535_v5  ;;  %v2690_v40 = vsub.f32 %v442_v41, %v535_v5  ;;  %v2692_v56 = vsub.f32 %v443_v22, %v538_v25  ;;  %vm199_vm13 = vcmp.eq.s32.totalorder %v63_v11, %v2219_v20 }
  0x97   :  { %v1916_v42 = vpack.c.bf16 %v795_v34, %v788_v4  ;;  %v1550_v13 = vsel %vm198_vm12, 1.0, %v2138_v27  ;;  %v1551_v19 = vsel %vm199_vm13, 1.0, %v2138_v27  ;;  %vm330_vm14 = vcmp.eq.s32.totalorder %v62_v35, %v2221_v21 }
  0x98   :  { %3100 = vst [vmem:[#allocation22_spill] sm:$0xff] %v2688_v28  ;;  %1893 = vmatprep.subr.bf16.mxu0 %v2688_v28  ;;  %v294_v16 = vsub.f32 %v1518_v49, %v1550_v13  ;;  %v295_v7 = vsub.f32 %v1519_v1, %v1551_v19  ;;  %vm331_vm15 = vcmp.eq.s32.totalorder %v63_v11, %v2221_v21  ;;  %v1582_v41 = vsel %vm330_vm14, 1.0, %v2138_v27  ;;  %v38_v11 = vld [vmem:[#allocation2] sm:$0xff] }
  0x99   :  { %1917 = vmatprep.subr.bf16.mxu1 %v1916_v42  ;;  %v1583_v25 = vsel %vm331_vm15, 1.0, %v2138_v27  ;;  %v3101_v20 = vand.u32 4294901760, %v2604_v39  ;;  %v3102_v4 = vand.u32 4294901760, %v2606_v32  ;;  %v2708_v35 = vand.u32 4294901760, %v39_v8 }
  0x9a   :  { %v426_v34 = vadd.f32 %v1582_v41, %v294_v16  ;;  %v427_v13 = vadd.f32 %v1583_v25, %v295_v7  ;;  %v3056_v49 = vand.u32 4294901760, %v2632_v0  ;;  %v3057_v21 = vand.u32 4294901760, %v2634_v37 }
  0x9b   :  { %v675_v22 = vsub.f32 %v2604_v39, %v3101_v20  ;;  %v682_v5 = vsub.f32 %v2606_v32, %v3102_v4  ;;  %3103 = vst [vmem:[#allocation23_spill] sm:$0xff] %v2708_v35  ;;  %v2713_v27 = vsub.f32 %v39_v8, %v2708_v35  ;;  %v1928_v19 = vpack.c.bf16 %v2360_v53, %v2355_v12 }
  0x9c   :  { %826 = vmatprep.mubr.f32.mxu1 %v2708_v35  ;;  %v487_v20 = vand.u32 4294901760, %v426_v34  ;;  %v490_v4 = vand.u32 4294901760, %v427_v13  ;;  %v801_v7 = vsub.f32 %v2632_v0, %v3056_v49  ;;  %v808_v16 = vsub.f32 %v2634_v37, %v3057_v21 }
  0x9d   :  { %v676_v42 = vand.u32 4294901760, %v675_v22  ;;  %v683_v1 = vand.u32 4294901760, %v682_v5  ;;  %v3059_v25 = vand.u32 4294901760, %v2713_v27  ;;  %v2725_v8 = vand.u32 4294901760, %v38_v11 }
  0x9e   :  { %v3058_v22 = vand.u32 4294901760, %v2662_v6  ;;  %v2728_v5 = vpack.c.bf16 %v490_v4, %v487_v20  ;;  %v2730_v35 = vsub.f32 %v426_v34, %v487_v20  ;;  %v2732_v28 = vsub.f32 %v427_v13, %v490_v4 }
  0x9f   :  { %v1918_v41 = vpack.c.bf16 %v683_v1, %v676_v42  ;;  %3104 = vst [vmem:[#allocation24_spill] sm:$0xff] %v2725_v8  ;;  %v802_v26 = vand.u32 4294901760, %v801_v7  ;;  %v543_v49 = vsub.f32 %v2713_v27, %v3059_v25  ;;  %v809_v21 = vand.u32 4294901760, %v808_v16 }
  0xa0   :  { %3105 = vst [vmem:[#allocation25_spill] sm:$0xff] %v2728_v5  ;;  %v2738_v42 = vsub.f32 %v38_v11, %v2725_v8  ;;  %v689_v1 = vsub.f32 %v2662_v6, %v3058_v22  ;;  %1895 = vmatpush3.bf16.msra.mxu0 %v2728_v5  ;;  %v3060_v34 = vand.u32 4294901760, %v2664_v54  ;;  %v3063_v13 = vand.u32 4294901760, %v2690_v40 }
  0xa1   :  { %1919 = vmatpush3.bf16.msra.mxu1 %v1918_v41  ;;  %v3066_v20 = vand.u32 4294901760, %v2692_v56  ;;  %v544_v4 = vand.u32 4294901760, %v543_v49  ;;  %v1920_v7 = vpack.c.bf16 %v809_v21, %v802_v26  ;;  %1929 = vmatprep.subr.bf16.mxu0 %v1928_v19  ;;  %v1930_v11 = vpack.c.bf16 %v2302_v63, %v2300_v62 }
  0xa2   :  { %3106 = vst [vmem:[#allocation26_spill] sm:$0xff] %v2738_v42  ;;  %v3067_v16 = vand.u32 4294901760, %v2738_v42  ;;  %v690_v41 = vand.u32 4294901760, %v689_v1  ;;  %v696_v22 = vsub.f32 %v2664_v54, %v3060_v34  ;;  %v815_v25 = vsub.f32 %v2690_v40, %v3063_v13 }
  0xa3   :  { %v822_v49 = vsub.f32 %v2692_v56, %v3066_v20  ;;  %545 = vmatprep.mubr.f32.mxu0 %v544_v4  ;;  %1921 = vmatprep.subr.bf16.mxu1 %v1920_v7  ;;  %v1932_v21 = vpack.c.bf16 %v2324_v31, %v2317_v14  ;;  %v3074_v19 = vand.u32 4294901760, %v2730_v35  ;;  %v3076_v1 = vand.u32 4294901760, %v2732_v28  ;;  %v40_v31 = vld [vmem:[#allocation2 + $0x10] sm:$0xff]  ;;  %v42_v14 = vld [vmem:[#allocation2 + $0x20] sm:$0xff] }
  0xa4   :  { %v549_v26 = vsub.f32 %v2738_v42, %v3067_v16  ;;  %v697_v34 = vand.u32 4294901760, %v696_v22  ;;  %v816_v5 = vand.u32 4294901760, %v815_v25  ;;  %v1938_v16 = vpack.c.bf16 %v2419_v45, %v2412_v38  ;;  %v41_v42 = vld [vmem:[#allocation2 + $0x18] sm:$0xff]  ;;  %v44_v45 = vld [vmem:[#allocation2 + $0x30] sm:$0xff] }
  0xa5   :  { %v823_v13 = vand.u32 4294901760, %v822_v49  ;;  %v703_v4 = vsub.f32 %v2730_v35, %v3074_v19  ;;  %v710_v7 = vsub.f32 %v2732_v28, %v3076_v1  ;;  %v43_v49 = vld [vmem:[#allocation2 + $0x28] sm:$0xff]  ;;  %v1934_v19 = vpack.c.bf16 %v2348_v47, %v2342_v43 }
  0xa6   :  { %v550_v20 = vand.u32 4294901760, %v549_v26  ;;  %v1922_v22 = vpack.c.bf16 %v697_v34, %v690_v41  ;;  %v2778_v63 = vand.u32 4294901760, %v41_v42  ;;  %v2780_v1 = vand.u32 4294901760, %v40_v31 }
  0xa7   :  { %v1924_v25 = vpack.c.bf16 %v823_v13, %v816_v5  ;;  %v704_v59 = vand.u32 4294901760, %v703_v4  ;;  %v711_v26 = vand.u32 4294901760, %v710_v7  ;;  %v2782_v5 = vand.u32 4294901760, %v43_v49 }
  0xa8   :  { %551 = vmatmul.mubr.f32.vlgmr.msra.gmra.mrb[0].mxu0 %v550_v20  ;;  %1923 = vmatpush3.bf16.msra.mxu1 %v1922_v22  ;;  %v2784_v13 = vand.u32 4294901760, %v42_v14  ;;  %v2787_v20 = vsub.f32 %v41_v42, %v2778_v63  ;;  %v2792_v41 = vand.u32 4294901760, %v45_v58 }
  0xa9   :  { %1931 = vmatpush3.bf16.msra.mxu0 %v1930_v11  ;;  %1925 = vmatprep.subr.bf16.mxu1 %v1924_v25  ;;  %v1926_v34 = vpack.c.bf16 %v711_v26, %v704_v59  ;;  %v2790_v11 = vsub.f32 %v40_v31, %v2780_v1  ;;  %v2795_v4 = vsub.f32 %v43_v49, %v2782_v5 }
  0xaa   :  { %1933 = vmatprep.subr.bf16.mxu0 %v1932_v21  ;;  %v2798_v7 = vsub.f32 %v42_v14, %v2784_v13  ;;  %v2800_v21 = vand.u32 4294901760, %v44_v45  ;;  %v3079_v59 = vand.u32 4294901760, %v2787_v20  ;;  %v2805_v22 = vsub.f32 %v45_v58, %v2792_v41 }
  0xab   :  { %v3078_v42 = vand.u32 4294901760, %v2790_v11  ;;  %v1940_v31 = vpack.c.bf16 %v2453_v15, %v2451_v29  ;;  %v3080_v14 = vand.u32 4294901760, %v2795_v4 }
  0xac   :  { %3107 = vst [vmem:[#allocation27_spill] sm:$0xff] %v2798_v7  ;;  %1927 = vmatpush3.bf16.msra.mxu1 %v1926_v34  ;;  %v3083_v25 = vand.u32 4294901760, %v2798_v7  ;;  %v2813_v49 = vsub.f32 %v44_v45, %v2800_v21 }
  0xad   :  { %1935 = vmatpush3.bf16.msra.mxu0 %v1934_v19  ;;  %1961 = vmatprep.subr.bf16.mxu1 %v2275_v48  ;;  %v558_v19 = vsub.f32 %v2787_v20, %v3079_v59  ;;  %v564_v58 = vsub.f32 %v2790_v11, %v3078_v42  ;;  %v573_v26 = vsub.f32 %v2795_v4, %v3080_v14 }
  0xae   :  { %1937 = vmatprep.subr.bf16.mxu0 %v1936_v2  ;;  %v579_v45 = vsub.f32 %v2798_v7, %v3083_v25  ;;  %v1942_v42 = vpack.c.bf16 %v2486_v60, %v2484_v18  ;;  %v1944_v14 = vpack.c.bf16 %v2517_v52, %v2515_v51  ;;  %v3113_v7 = vand.u32 4294901760, %v2486_v60 }
  0xaf   :  { %828 = vmatmul.mubr.f32.vlgmr.msra.gmra.mrb[0].mxu1 %v2725_v8  ;;  %v559_v59 = vand.u32 4294901760, %v558_v19  ;;  %v565_v2 = vand.u32 4294901760, %v564_v58  ;;  %v3108_v8 = vand.u32 4294901760, %v2805_v22  ;;  %v574_v34 = vand.u32 4294901760, %v573_v26 }
  0xb0   :  { %1963 = vmatpush3.bf16.msra.mxu1 %v2298_v61  ;;  %833 = vmatprep.mubr.f32.mxu1 %v2778_v63  ;;  %v3110_v19 = vand.u32 4294901760, %v2451_v29  ;;  %v3115_v26 = vand.u32 4294901760, %v2517_v52  ;;  %v3116_v29 = vand.u32 4294901760, %v2541_v23  ;;  %v3120_v52 = vand.u32 4294901760, %v2604_v39 }
  0xb1   :  { %1939 = vmatpush3.bf16.msra.mxu0 %v1938_v16  ;;  %1965 = vmatprep.subr.bf16.mxu1 %v2322_v30  ;;  %v588_v25 = vsub.f32 %v2805_v22, %v3108_v8  ;;  %v3109_v16 = vand.u32 4294901760, %v2813_v49  ;;  %v3112_v30 = vand.u32 4294901760, %v2484_v18  ;;  %v580_v8 = vand.u32 4294901760, %v579_v45 }
  0xb2   :  { %1941 = vmatprep.subr.bf16.mxu0 %v1940_v31  ;;  %560 = vmatprep.mubr.f32.mxu0 %v559_v59  ;;  %v3111_v31 = vand.u32 4294901760, %v2453_v15  ;;  %v3114_v59 = vand.u32 4294901760, %v2515_v51  ;;  %v3117_v15 = vand.u32 4294901760, %v2548_v55  ;;  %v3118_v18 = vand.u32 4294901760, %v2574_v24 }
  0xb3   :  { %v594_v61 = vsub.f32 %v2813_v49, %v3109_v16  ;;  %v2853_v48 = vpack.c.bf16 %v3113_v7, %v3112_v30  ;;  %566 = vmatmul.mubr.f32.gmra.mrb[2].mxu0 %v565_v2  ;;  %835 = vmatmul.mubr.f32.gmra.mrb[2].mxu1 %v2780_v1  ;;  %v3119_v30 = vand.u32 4294901760, %v2576_v3  ;;  %v1946_v51 = vpack.c.bf16 %v2548_v55, %v2541_v23 }
  0xb4   :  { %v2847_v58 = vpack.c.bf16 %v3111_v31, %v3110_v19  ;;  %v2860_v16 = vpack.c.bf16 %v3115_v26, %v3114_v59  ;;  %v2866_v19 = vpack.c.bf16 %v3117_v15, %v3116_v29  ;;  %1967 = vmatpush3.bf16.msra.mxu1 %v2346_v46  ;;  %v3121_v7 = vand.u32 4294901760, %v2606_v32  ;;  %575 = vmatprep.mubr.f32.mxu0 %v574_v34  ;;  %v3126_v34 = vld [vmem:[#allocation13_spill] sm:$0xff]  ;;  %v3128_v26 = vld [vmem:[#allocation20_spill] sm:$0xff]  ;;  %v3129_v29 = vld [vmem:[#allocation14_spill] sm:$0xff] }
  0xb5   :  { %v2872_v60 = vpack.c.bf16 %v3119_v30, %v3118_v18  ;;  %1943 = vmatpush3.bf16.msra.mxu0 %v1942_v42  ;;  %1969 = vmatprep.subr.bf16.mxu1 %v2377_v57  ;;  %v1948_v45 = vpack.c.bf16 %v2576_v3, %v2574_v24  ;;  %v589_v31 = vand.u32 4294901760, %v588_v25  ;;  %v595_v42 = vand.u32 4294901760, %v594_v61  ;;  %v3131_v18 = vld [vmem:[#allocation16_spill] sm:$0xff] }
  0xb6   :  { %v2881_v2 = vpack.c.bf16 %v3121_v7, %v3120_v52  ;;  %1945 = vmatprep.subr.bf16.mxu0 %v1944_v14  ;;  %840 = vmatprep.mubr.f32.mxu1 %v2782_v5  ;;  %v1950_v23 = vpack.c.bf16 %v2606_v32, %v2604_v39  ;;  %v1952_v3 = vpack.c.bf16 %v2634_v37, %v2632_v0  ;;  %v3122_v24 = vand.u32 4294901760, %v2713_v27 }
  0xb7   :  { %581 = vmatmul.mubr.f32.gmra.mrb[4].mxu0 %v580_v8  ;;  %842 = vmatmul.mubr.f32.gmra.mrb[4].mxu1 %v2784_v13  ;;  %v1954_v61 = vpack.c.bf16 %v2664_v54, %v2662_v6  ;;  %v1956_v55 = vpack.c.bf16 %v2692_v56, %v2690_v40  ;;  %v1958_v39 = vpack.c.bf16 %v2732_v28, %v2730_v35  ;;  %v3123_v32 = vand.u32 4294901760, %v2355_v12  ;;  %v3133_v12 = vld [vmem:[#allocation26_spill] sm:$0xff] }
  0xb8   :  { %1971 = vmatpush3.bf16.msra.mxu1 %v2417_v44  ;;  %590 = vmatprep.mubr.f32.mxu0 %v589_v31  ;;  %v3124_v14 = vand.u32 4294901760, %v2360_v53  ;;  %v3127_v8 = vand.u32 4294901760, %v3126_v34  ;;  %v3130_v15 = vand.u32 4294901760, %v3129_v29  ;;  %v3132_v30 = vand.u32 4294901760, %v3131_v18  ;;  %v3134_v53 = vld [vmem:[#allocation21_spill] sm:$0xff]  ;;  %v3151_v34 = vld [vmem:[#allocation15_spill] sm:$0xff] }
  0xb9   :  { %1947 = vmatpush3.bf16.msra.mxu0 %v1946_v51  ;;  %1973 = vmatprep.subr.bf16.mxu1 %v2449_v9  ;;  %v3135_v52 = vand.u32 4294901760, %v2342_v43  ;;  %v3138_v31 = vld [vmem:[#allocation17_spill] sm:$0xff]  ;;  %v3143_v43 = vand.u32 4294901760, %v2412_v38  ;;  %v3150_v38 = vand.u32 4294901760, %v2787_v20 }
  0xba   :  { %1949 = vmatprep.subr.bf16.mxu0 %v1948_v45  ;;  %847 = vmatprep.mubr.f32.mxu1 %v2792_v41  ;;  %v1992_v25 = vpack.c.bf16 %v3124_v14, %v3123_v32  ;;  %v1996_v51 = vpack.c.bf16 %v3132_v30, %v3130_v15  ;;  %v3137_v45 = vld [vmem:[#allocation22_spill] sm:$0xff]  ;;  %v3146_v32 = vld [vmem:[#allocation11_spill] sm:$0xff] }
  0xbb   :  { %596 = vmatmul.mubr.f32.gmra.mrb[6].mxu0 %v595_v42  ;;  %849 = vmatmul.mubr.f32.gmra.mrb[6].mxu1 %v2800_v21  ;;  %v3139_v42 = vand.u32 4294901760, %v3138_v31  ;;  %v3147_v14 = vld [vmem:[#allocation27_spill] sm:$0xff] }
  0xbc   :  { %1975 = vmatpush3.bf16.msra.mxu1 %v2482_v17  ;;  %984 = vmatprep.mubr.f32.mxu0 %v2713_v27  ;;  %v3125_v27 = vand.u32 4294901760, %v2300_v62  ;;  %v3136_v62 = vand.u32 4294901760, %v2348_v47 }
  0xbd   :  { %1951 = vmatpush3.bf16.msra.mxu0 %v1950_v23  ;;  %1977 = vmatprep.subr.bf16.mxu1 %v2513_v50  ;;  %v3140_v23 = vld [vmem:[#allocation18_spill] sm:$0xff] }
  0xbe   :  { %1953 = vmatprep.subr.bf16.mxu0 %v1952_v3  ;;  %1118 = vmatprep.mubr.f32.mxu1 %v3122_v24  ;;  %v1994_v59 = vpack.c.bf16 %v3127_v8, %v3125_v27  ;;  %v1998_v7 = vpack.c.bf16 %v3136_v62, %v3135_v52  ;;  %v3141_v3 = vand.u32 4294901760, %v3140_v23  ;;  %v3144_v24 = vld [vmem:[#allocation19_spill] sm:$0xff]  ;;  %v3149_v27 = vld [vmem:[#allocation12_spill] sm:$0xff]  ;;  %v3152_v8 = vand.u32 4294901760, %v2790_v11 }
  0xbf   :  { %v3145_v47 = vand.u32 4294901760, %v3144_v24 }
  0xc0   :  { %1979 = vmatpush3.bf16.msra.mxu1 %v2546_v36 }
  0xc1   :  { %1955 = vmatpush3.bf16.msra.mxu0 %v1954_v61  ;;  %1981 = vmatprep.subr.bf16.mxu1 %v2572_v33  ;;  %v2000_v61 = vpack.c.bf16 %v3141_v3, %v3139_v42 }
  0xc2   :  { %1957 = vmatprep.subr.bf16.mxu0 %v1956_v55  ;;  %v3142_v55 = vld [vmem:[#allocation25_spill] sm:$0xff] }
  0xc4   :  { %1983 = vmatpush3.bf16.msra.mxu1 %v2602_v10 }
  0xc5   :  { %1959 = vmatpush3.bf16.msra.mxu0 %v1958_v39  ;;  %1985 = vmatprep.subr.bf16.mxu1 %v3128_v26  ;;  %v2002_v39 = vpack.c.bf16 %v3145_v47, %v3143_v43 }
  0xc6   :  { %1993 = vmatprep.subr.bf16.mxu0 %v1992_v25  ;;  %v3148_v25 = vand.u32 4294901760, %v3133_v12 }
  0xc8   :  { %987 = vmatmul.mubr.f32.vlgmr.msra.gmra.mrb[8].mxu0 %v3133_v12  ;;  %1987 = vmatpush3.bf16.msra.mxu1 %v3134_v53 }
  0xc9   :  { %1995 = vmatpush3.bf16.msra.mxu0 %v1994_v59  ;;  %993 = vmatprep.mubr.f32.mxu0 %v2787_v20  ;;  %v3153_v59 = vand.u32 4294901760, %v2795_v4  ;;  %v3154_v20 = vld [vmem:[#allocation23_spill] sm:$0xff] }
  0xca   :  { %1989 = vmatprep.subr.bf16.mxu1 %v3137_v45  ;;  %1997 = vmatprep.subr.bf16.mxu0 %v1996_v51 }
  0xcc   :  { %996 = vmatmul.mubr.f32.gmra.mrb[10].mxu0 %v2790_v11  ;;  %1991 = vmatpush3.bf16.msra.mxu1 %v3142_v55  ;;  %v3158_v11 = vand.u32 4294901760, %v2634_v37  ;;  %v3162_v37 = vand.u32 4294901760, %v2690_v40 }
  0xcd   :  { %1999 = vmatpush3.bf16.msra.mxu0 %v1998_v7  ;;  %1002 = vmatprep.mubr.f32.mxu0 %v2795_v4 }
  0xce   :  { %2001 = vmatprep.subr.bf16.mxu0 %v2000_v61  ;;  %2025 = vmatprep.subr.bf16.mxu1 %v3146_v32 }
  0xcf   :  { %1122 = vmatmul.mubr.f32.vlgmr.msra.gmra.mrb[8].mxu1 %v3148_v25 }
  0xd0   :  { %1005 = vmatmul.mubr.f32.gmra.mrb[12].mxu0 %v3147_v14  ;;  %2027 = vmatpush3.bf16.msra.mxu1 %v3149_v27 }
  0xd1   :  { %2003 = vmatpush3.bf16.msra.mxu0 %v2002_v39  ;;  %1011 = vmatprep.mubr.f32.mxu0 %v2805_v22 }
  0xd2   :  { %1129 = vmatprep.mubr.f32.mxu1 %v3150_v38  ;;  %2005 = vmatprep.subr.bf16.mxu0 %v2847_v58  ;;  %v3155_v58 = vand.u32 4294901760, %v3147_v14 }
  0xd3   :  { %2029 = vmatprep.subr.bf16.mxu1 %v3151_v34  ;;  %1133 = vmatmul.mubr.f32.gmra.mrb[10].mxu1 %v3152_v8 }
  0xd4   :  { %1014 = vmatmul.mubr.f32.gmra.mrb[14].mxu0 %v2813_v49  ;;  %2031 = vmatpush3.bf16.msra.mxu1 %v2346_v46  ;;  %v3157_v46 = vand.u32 4294901760, %v2632_v0  ;;  %v3163_v0 = vand.u32 4294901760, %v2692_v56 }
  0xd5   :  { %2007 = vmatpush3.bf16.msra.mxu0 %v2853_v48  ;;  %1140 = vmatprep.mubr.f32.mxu1 %v3153_v59  ;;  %v3156_v48 = vand.u32 4294901760, %v2805_v22  ;;  %v3161_v22 = vand.u32 4294901760, %v2664_v54 }
  0xd6   :  { %2009 = vmatprep.subr.bf16.mxu0 %v2860_v16  ;;  %2033 = vmatprep.subr.bf16.mxu1 %v2377_v57  ;;  %v2016_v4 = vpack.c.bf16 %v3158_v11, %v3157_v46  ;;  %v3159_v57 = vand.u32 4294901760, %v2813_v49 }
  0xd7   :  { %1321 = vmatprep.mubr.f32.mxu0 %v3154_v20  ;;  %1144 = vmatmul.mubr.f32.gmra.mrb[12].mxu1 %v3155_v58 }
  0xd8   :  { %2035 = vmatpush3.bf16.msra.mxu1 %v2417_v44  ;;  %1151 = vmatprep.mubr.f32.mxu1 %v3156_v48  ;;  %v3160_v44 = vand.u32 4294901760, %v2662_v6  ;;  %v3165_v6 = vand.u32 4294901760, %v2732_v28 }
  0xd9   :  { %2011 = vmatpush3.bf16.msra.mxu0 %v2866_v19  ;;  %2037 = vmatprep.subr.bf16.mxu1 %v2449_v9  ;;  %v2020_v9 = vpack.c.bf16 %v3163_v0, %v3162_v37 }
  0xda   :  { %2013 = vmatprep.subr.bf16.mxu0 %v2872_v60  ;;  %v2018_v16 = vpack.c.bf16 %v3161_v22, %v3160_v44 }
  0xdb   :  { %1155 = vmatmul.mubr.f32.gmra.mrb[14].mxu1 %v3159_v57 }
  0xdc   :  { %2039 = vmatpush3.bf16.msra.mxu1 %v2482_v17  ;;  %1446 = vmatprep.mubr.f32.mxu1 %v3154_v20  ;;  %v3164_v17 = vand.u32 4294901760, %v2730_v35 }
  0xdd   :  { %2015 = vmatpush3.bf16.msra.mxu0 %v2881_v2  ;;  %2041 = vmatprep.subr.bf16.mxu1 %v2513_v50  ;;  %v3166_v50 = vld [vmem:[#allocation24_spill] sm:$0xff] }
  0xde   :  { %2017 = vmatprep.subr.bf16.mxu0 %v2016_v4  ;;  %v2022_v49 = vpack.c.bf16 %v3165_v6, %v3164_v17 }
  0xe0   :  { %2043 = vmatpush3.bf16.msra.mxu1 %v2546_v36 }
  0xe1   :  { %2019 = vmatpush3.bf16.msra.mxu0 %v2018_v16  ;;  %2045 = vmatprep.subr.bf16.mxu1 %v2572_v33 }
  0xe2   :  { %2021 = vmatprep.subr.bf16.mxu0 %v2020_v9 }
  0xe4   :  { %2047 = vmatpush3.bf16.msra.mxu1 %v2602_v10 }
  0xe5   :  { %2023 = vmatpush3.bf16.msra.mxu0 %v2022_v49  ;;  %2049 = vmatprep.subr.bf16.mxu1 %v3128_v26 }
  0xe8   :  { %1323 = vmatmul.mubr.f32.vlgmr.msra.gmra.mrb[16].mxu0 %v3166_v50  ;;  %2051 = vmatpush3.bf16.msra.mxu1 %v3134_v53 }
  0xe9   :  { %1328 = vmatprep.mubr.f32.mxu0 %v2778_v63  ;;  %2053 = vmatprep.subr.bf16.mxu1 %v3137_v45 }
  0xec   :  { %1330 = vmatmul.mubr.f32.gmra.mrb[18].mxu0 %v2780_v1  ;;  %2055 = vmatpush3.bf16.msra.mxu1 %v3142_v55 }
  0xed   :  { %1335 = vmatprep.mubr.f32.mxu0 %v2782_v5 }
  0xef   :  { %1448 = vmatmul.mubr.f32.vlgmr.msra.gmra.mrb[16].mxu1 %v3166_v50 }
  0xf0   :  { %1337 = vmatmul.mubr.f32.gmra.mrb[20].mxu0 %v2784_v13  ;;  %1453 = vmatprep.mubr.f32.mxu1 %v2778_v63 }
  0xf1   :  { %1342 = vmatprep.mubr.f32.mxu0 %v2792_v41 }
  0xf3   :  { %1455 = vmatmul.mubr.f32.gmra.mrb[18].mxu1 %v2780_v1 }
  0xf4   :  { %1344 = vmatmul.mubr.f32.gmra.mrb[22].mxu0 %v2800_v21  ;;  %1460 = vmatprep.mubr.f32.mxu1 %v2782_v5 }
  0xf7   :  { %1462 = vmatmul.mubr.f32.gmra.mrb[20].mxu1 %v2784_v13 }
  0xf8   :  { %1467 = vmatprep.mubr.f32.mxu1 %v2792_v41 }
  0xfb   :  { %1469 = vmatmul.mubr.f32.gmra.mrb[22].mxu1 %v2800_v21 }
 0x17b   :  { %v1632_v36 = vpop.f32.mrb[0].mxu0 }
 0x17c   :  { %v1633_v33 = vpop.f32.mrb[1].mxu0 }
 0x17d   :  { %v1634_v10 = vadd.f32 %v1633_v33, %v1632_v36 }
 0x182   :  { %v1676_v54 = vpop.f32.mrb[0].mxu1 }
 0x183   :  { %v1677_v28 = vpop.f32.mrb[1].mxu1 }
 0x184   :  { %v1678_v40 = vadd.f32 %v1677_v28, %v1676_v54 }
 0x186   :  { %v830_v56 = vadd.f32 %v1678_v40, %v1634_v10  ;;  %v1635_v63 = vpop.f32.mrb[2].mxu0  ;;  %v1679_v35 = vpop.f32.mrb[2].mxu1 }
 0x187   :  { %v1636_v19 = vpop.f32.mrb[3].mxu0  ;;  %v1680_v60 = vpop.f32.mrb[3].mxu1 }
 0x188   :  { %v1637_v1 = vadd.f32 %v1636_v19, %v1635_v63  ;;  %v1681_v2 = vadd.f32 %v1680_v60, %v1679_v35 }
 0x18a   :  { %v837_v5 = vadd.f32 %v1681_v2, %v1637_v1  ;;  %v1638_v26 = vpop.f32.mrb[4].mxu0  ;;  %v1682_v13 = vpop.f32.mrb[4].mxu1 }
 0x18b   :  { %v1639_v29 = vpop.f32.mrb[5].mxu0  ;;  %v1683_v41 = vpop.f32.mrb[5].mxu1 }
 0x18c   :  { %v1640_v15 = vadd.f32 %v1639_v29, %v1638_v26  ;;  %v1684_v21 = vadd.f32 %v1683_v41, %v1682_v13 }
 0x18e   :  { %v1641_v18 = vpop.f32.mrb[6].mxu0  ;;  %v844_v30 = vadd.f32 %v1684_v21, %v1640_v15  ;;  %v1685_v51 = vpop.f32.mrb[6].mxu1 }
 0x18f   :  { %v1642_v12 = vpop.f32.mrb[7].mxu0  ;;  %v1686_v53 = vpop.f32.mrb[7].mxu1 }
 0x190   :  { %v1643_v52 = vadd.f32 %v1642_v12, %v1641_v18  ;;  %v1687_v62 = vadd.f32 %v1686_v53, %v1685_v51 }
 0x192   :  { %v851_v7 = vadd.f32 %v1687_v62, %v1643_v52 }
 0x19b   :  { %v1720_v45 = vpop.f32.mrb[8].mxu0 }
 0x19c   :  { %v1721_v31 = vpop.f32.mrb[9].mxu0 }
 0x19d   :  { %v1722_v42 = vadd.f32 %v1721_v31, %v1720_v45 }
 0x19f   :  { %v989_v23 = vadd.f32 %v1722_v42, %v830_v56  ;;  %v1723_v3 = vpop.f32.mrb[10].mxu0 }
 0x1a0   :  { %v1724_v61 = vpop.f32.mrb[11].mxu0 }
 0x1a1   :  { %v1725_v55 = vadd.f32 %v1724_v61, %v1723_v3 }
 0x1a2   :  { %v1764_v47 = vpop.f32.mrb[8].mxu1 }
 0x1a3   :  { %v998_v43 = vadd.f32 %v1725_v55, %v837_v5  ;;  %v1726_v24 = vpop.f32.mrb[12].mxu0  ;;  %v1765_v32 = vpop.f32.mrb[9].mxu1 }
 0x1a4   :  { %v1727_v39 = vpop.f32.mrb[13].mxu0  ;;  %v1766_v25 = vadd.f32 %v1765_v32, %v1764_v47 }
 0x1a5   :  { %v1728_v14 = vadd.f32 %v1727_v39, %v1726_v24 }
 0x1a6   :  { %v1124_v38 = vadd.f32 %v1766_v25, %v989_v23  ;;  %v1767_v8 = vpop.f32.mrb[10].mxu1 }
 0x1a7   :  { %v1007_v27 = vadd.f32 %v1728_v14, %v844_v30  ;;  %v1729_v34 = vpop.f32.mrb[14].mxu0  ;;  %v1768_v20 = vpop.f32.mrb[11].mxu1 }
 0x1a8   :  { %v1730_v59 = vpop.f32.mrb[15].mxu0  ;;  %v1769_v48 = vadd.f32 %v1768_v20, %v1767_v8 }
 0x1a9   :  { %v1731_v58 = vadd.f32 %v1730_v59, %v1729_v34 }
 0x1aa   :  { %v1135_v11 = vadd.f32 %v1769_v48, %v998_v43  ;;  %v1770_v4 = vpop.f32.mrb[12].mxu1 }
 0x1ab   :  { %v1016_v46 = vadd.f32 %v1731_v58, %v851_v7  ;;  %v1771_v57 = vpop.f32.mrb[13].mxu1 }
 0x1ac   :  { %v1772_v44 = vadd.f32 %v1771_v57, %v1770_v4 }
 0x1ae   :  { %v1146_v22 = vadd.f32 %v1772_v44, %v1007_v27  ;;  %v1773_v16 = vpop.f32.mrb[14].mxu1 }
 0x1af   :  { %v1774_v37 = vpop.f32.mrb[15].mxu1 }
 0x1b0   :  { %v1775_v0 = vadd.f32 %v1774_v37, %v1773_v16 }
 0x1b2   :  { %v1157_v9 = vadd.f32 %v1775_v0, %v1016_v46 }
 0x1bb   :  { %v1808_v17 = vpop.f32.mrb[16].mxu0 }
 0x1bc   :  { %v1809_v6 = vpop.f32.mrb[17].mxu0 }
 0x1bd   :  { %v1810_v49 = vadd.f32 %v1809_v6, %v1808_v17 }
 0x1bf   :  { %v1325_v50 = vadd.f32 %v1810_v49, %v1124_v38  ;;  %v1811_v36 = vpop.f32.mrb[18].mxu0 }
 0x1c0   :  { %v1812_v33 = vpop.f32.mrb[19].mxu0 }
 0x1c1   :  { %v1813_v10 = vadd.f32 %v1812_v33, %v1811_v36 }
 0x1c2   :  { %v1852_v40 = vpop.f32.mrb[16].mxu1 }
 0x1c3   :  { %v1332_v54 = vadd.f32 %v1813_v10, %v1135_v11  ;;  %v1814_v28 = vpop.f32.mrb[20].mxu0  ;;  %v1853_v63 = vpop.f32.mrb[17].mxu1 }
 0x1c4   :  { %v1815_v56 = vpop.f32.mrb[21].mxu0  ;;  %v1854_v19 = vadd.f32 %v1853_v63, %v1852_v40 }
 0x1c5   :  { %v1816_v35 = vadd.f32 %v1815_v56, %v1814_v28 }
 0x1c6   :  { %v1450_v1 = vadd.f32 %v1854_v19, %v1325_v50  ;;  %v1855_v5 = vpop.f32.mrb[18].mxu1 }
 0x1c7   :  { %v1339_v60 = vadd.f32 %v1816_v35, %v1146_v22  ;;  %v1817_v2 = vpop.f32.mrb[22].mxu0  ;;  %v1856_v13 = vpop.f32.mrb[19].mxu1 }
 0x1c8   :  { %v1818_v26 = vpop.f32.mrb[23].mxu0  ;;  %v1857_v41 = vadd.f32 %v1856_v13, %v1855_v5  ;;  %v1474_v51 = vand.u32 2147483647, %v1450_v1 }
 0x1c9   :  { %v1819_v29 = vadd.f32 %v1818_v26, %v1817_v2 }
 0x1ca   :  { %v1457_v21 = vadd.f32 %v1857_v41, %v1332_v54  ;;  %v1858_v18 = vpop.f32.mrb[20].mxu1 }
 0x1cb   :  { %v1346_v15 = vadd.f32 %v1819_v29, %v1157_v9  ;;  %v1859_v30 = vpop.f32.mrb[21].mxu1 }
 0x1cc   :  { %v1475_v12 = vand.u32 2147483647, %v1457_v21  ;;  %v1860_v53 = vadd.f32 %v1859_v30, %v1858_v18 }
 0x1ce   :  { %v1478_v52 = vadd.f32 %v1475_v12, %v1474_v51  ;;  %v1464_v62 = vadd.f32 %v1860_v53, %v1339_v60  ;;  %v1861_v7 = vpop.f32.mrb[22].mxu1 }
 0x1cf   :  { %v1862_v45 = vpop.f32.mrb[23].mxu1 }
 0x1d0   :  { %v1476_v31 = vand.u32 2147483647, %v1464_v62  ;;  %v1863_v42 = vadd.f32 %v1862_v45, %v1861_v7 }
 0x1d2   :  { %v1479_v23 = vadd.f32 %v1478_v52, %v1476_v31  ;;  %v1471_v3 = vadd.f32 %v1863_v42, %v1346_v15 }
 0x1d4   :  { %v1477_v61 = vand.u32 2147483647, %v1471_v3 }
 0x1d6   :  { %v1480_v55 = vadd.f32 %v1479_v23, %v1477_v61 }
 0x1d8   :  { %v1481_v43 = vrot.slane %v1480_v55, 4 }
 0x1da   :  { %v1482_v24 = vadd.f32 %v1481_v43, %v1480_v55 }
 0x1dc   :  { %v1483_v47 = vrot.slane %v1482_v24, 2 }
 0x1de   :  { %v1484_v39 = vadd.f32 %v1483_v47, %v1482_v24 }
 0x1e0   :  { %v1485_v32 = vrot.slane %v1484_v39, 1 }
 0x1e2   :  { %v1486_v14 = vadd.f32 %v1485_v32, %v1484_v39 }
 0x1e4   :  { %1487 = vst [vmem:[#allocation7] sm:$0x1] %v1486_v14 }
 0x1e5   :  { %2117 = shalt.err (!%p2114_p6)
}
 0x1e6   :  { %s2118_s11 = scalar_lea.hbm %s3027_s2, 16 }
 0x1e7   :  { %p2119_p7 = scmp.ne.s32.totalorder %s3027_s2, %s2118_s11  ;;  %p2122_p8 = scmp.lt.u32.totalorder %s2118_s11, %s3027_s2 }
 0x1e9   :  { %p2124_p9 = pnand %p2122_p8, %p2119_p7 }
 0x1eb   :  { %2127 = shalt.err (!%p2124_p9)
}
 0x1ec   :  { %1497 = dma.vmem_to_hbm [thread:$0]  %s1495_s6, 16, %s3027_s2, [#allocation4]  }
 0x1ed   :  { %2132 = dma.done.wait [#allocation4], 16  }
 0x1ee   :  { %2133 = vsyncadd [#allocation4], 4294967280 }
 0x1ef   :  { %1501 = vsyncpa [#allocation3], 1 }
 0x1f0   :  { %1502 = vsyncpa [#allocation6], 1 }
 0x1f1   :  { %1503 = vsyncpa [#allocation4], 1 }

</bundles_post_ra>
